<compile_context>
chip_gen: v6e
topology: v6e:2x2x1
jax: 0.10.0
libtpu: 0.0.40
codegen_flags: <defaults>
</compile_context>

<pallas_src>
import numpy as np
import jax
import jax.numpy as jnp
from jax.experimental import pallas as pl
from jax.experimental.pallas import tpu as pltpu

LENGTH = 16          # module `length` (impulse-response length)
SAMPLE_RATE = 16000  # module `sample_rate`

_HALO = 128          # lane-aligned carry width; must cover length - 1 taps
_MAX_ROW_TILE = 256  # max sublane rows fed to the MXU per grid step


def _round_up(x, m):
    return (x + m - 1) // m * m


def _cdiv(a, b):
    return -(-a // b)


# --------------------------------------------------------------------------- #
# Pallas kernel: per 128-lane output slice, one K=256 dot
#   LHS = [previous 128 samples || current 128 samples],  RHS = stacked Toeplitz
# --------------------------------------------------------------------------- #
def _reverb_fir_kernel(x_ref, halo_ref, t_ref, o_ref):
    """Causal FIR over each folded row.

    x_ref:    (ROW, CHUNK)  one signal chunk per row
    halo_ref: (ROW, 128)    last 128 samples of each row's previous chunk
    t_ref:    (256, 128)    stacked Toeplitz (rows 0..127: taps into the previous
                            128 samples; rows 128..255: in-slice taps)
    o_ref:    (ROW, CHUNK)
    """
    t = t_ref[...]
    t_prev = t[:_HALO, :]
    t_cur = t[_HALO:, :]
    nsub = x_ref.shape[1] // _HALO

    # First 128-lane slice: the "previous 128 samples" come from the halo input.
    o_ref[:, 0:_HALO] = (
        jnp.dot(halo_ref[...], t_prev, preferred_element_type=jnp.float32)
        + jnp.dot(x_ref[:, 0:_HALO], t_cur, preferred_element_type=jnp.float32)
    ).astype(o_ref.dtype)

    # Remaining slices: the previous 128 samples are adjacent in the same block,
    # so a single contiguous K=256 dot folds the carry accumulation into the MXU.
    for s in range(1, nsub):
        lhs = x_ref[:, (s - 1) * _HALO:(s + 1) * _HALO]
        o_ref[:, s * _HALO:(s + 1) * _HALO] = jnp.dot(
            lhs, t, preferred_element_type=jnp.float32).astype(o_ref.dtype)


# --------------------------------------------------------------------------- #
# Parameter transforms (tiny; plain JAX, consumed by the kernel)
# --------------------------------------------------------------------------- #
def _build_impulse(noise, decay, wet, length, sample_rate):
    t = jnp.arange(length, dtype=jnp.float32) / float(sample_rate)
    decay = jnp.asarray(decay, jnp.float32)
    wet = jnp.asarray(wet, jnp.float32)
    env = jnp.exp(-jax.nn.softplus(-decay) * t * 500.0)          # stable softplus
    imp = jnp.asarray(noise, jnp.float32).reshape(-1) * env * jax.nn.sigmoid(wet)
    return imp.at[0].set(1.0)


def _stacked_toeplitz(imp, length):
    # T[k, q] = imp[q - (k - 128)]  when 0 <= q - k + 128 < length, else 0.
    # Output lane q of a 128-lane slice reads LHS column k, which holds the
    # sample at offset (k - 128) relative to the slice start (k < 128 => the
    # previous 128 samples / halo).
    k = jnp.arange(2 * _HALO)[:, None]
    q = jnp.arange(_HALO)[None, :]
    d = q - k + _HALO
    taps = jnp.where((d >= 0) & (d < length),
                     jnp.take(imp, jnp.clip(d, 0, length - 1)), 0.0)
    # NOTE: on v5e this RHS could be cast to bf16 (keeping f32 accumulation) for
    # extra MXU headroom; kept f32 here to preserve ~1e-3 accuracy.
    return taps.astype(jnp.float32)


# --------------------------------------------------------------------------- #
# Forward wrapper
# --------------------------------------------------------------------------- #
def reverb_forward(x, noise, decay, wet, *, length=LENGTH,
                   sample_rate=SAMPLE_RATE, chunk=512):
    """x: (B, N, 1) float32 (same axis convention as the PyTorch module)."""
    B, N, _ = x.shape
    assert N >= length, "signal length must be >= reverb length (module requires it)"
    assert length <= _HALO + 1, "FIR taps must fit within the 128-sample halo"

    x2d = x[..., 0].astype(jnp.float32)
    imp = _build_impulse(noise, decay, wet, length, sample_rate)
    t_mat = _stacked_toeplitz(imp, length)                       # (256, 128)

    # Lane-aligned chunk width (samples per folded row), capped by padded N.
    chunk = min(_round_up(max(chunk, _HALO), _HALO), _round_up(N, _HALO))
    n_chunks = _cdiv(N, chunk)
    n_pad = n_chunks * chunk
    if n_pad != N:   # right zero-pad never changes y[:, :N] for a causal filter
        x2d = jnp.pad(x2d, ((0, 0), (0, n_pad - N)))

    # Fold time chunks into the row (sublane) axis — free reshapes that fill the
    # MXU row dimension even for tiny batch sizes.
    rows = B * n_chunks
    x3 = x2d.reshape(B, n_chunks, chunk)
    x_rows = x3.reshape(rows, chunk)

    # Cross-chunk halo: last 128 samples of the SAME signal's previous chunk
    # (zeros for each signal's first chunk).  Small: 128/chunk of the signal.
    if n_chunks > 1:
        prev_tails = jnp.concatenate(
            [jnp.zeros((B, 1, _HALO), jnp.float32), x3[:, :-1, chunk - _HALO:]],
            axis=1).reshape(rows, _HALO)
    else:
        prev_tails = jnp.zeros((rows, _HALO), jnp.float32)

    # Row tile: fill the MXU (up to 256 rows) but keep >= 2 "parallel" grid
    # steps when there is enough work so both v7x TensorCores get row blocks.
    if rows % 8 != 0 and rows <= _MAX_ROW_TILE:
        row_tile = rows              # full-extent block (legal for any size)
    else:
        row_tile = min(_MAX_ROW_TILE, _round_up(rows, 8))
        if rows >= 16:
            row_tile = min(row_tile, _round_up(_cdiv(rows, 2), 8))
    n_row_blocks = _cdiv(rows, row_tile)

    y_rows = pl.pallas_call(
        _reverb_fir_kernel,
        out_shape=jax.ShapeDtypeStruct((rows, chunk), jnp.float32),
        grid_spec=pltpu.PrefetchScalarGridSpec(
            num_scalar_prefetch=0,
            grid=(n_row_blocks,),
            in_specs=[
                pl.BlockSpec((row_tile, chunk), lambda i: (i, 0)),    # signal rows
                pl.BlockSpec((row_tile, _HALO), lambda i: (i, 0)),    # prev-chunk tails
                pl.BlockSpec((2 * _HALO, _HALO), lambda i: (0, 0)),   # Toeplitz (resident)
            ],
            out_specs=pl.BlockSpec((row_tile, chunk), lambda i: (i, 0)),
        ),
        compiler_params=pltpu.CompilerParams(
            dimension_semantics=("parallel",),   # shard row blocks across TCs (v7x)
        ),
    )(x_rows, prev_tails, t_mat)

    y = y_rows.reshape(B, n_pad)[:, :N]
    return y[..., None]                                           # (B, N, 1)


# --------------------------------------------------------------------------- #
# Numpy float64 reference mirroring the PyTorch FFT-based forward
# --------------------------------------------------------------------------- #
def reverb_reference(x, noise, decay, wet, *, length=LENGTH, sample_rate=SAMPLE_RATE):
    x = np.asarray(x, np.float64)
    noise = np.asarray(noise, np.float64)
    decay = float(decay)
    wet = float(wet)
    B, N, _ = x.shape
    t = np.arange(length, dtype=np.float64) / sample_rate
    imp = noise * np.exp(-np.log1p(np.exp(-decay)) * t * 500.0)
    imp = imp * (1.0 / (1.0 + np.exp(-wet)))
    imp[0] = 1.0
    imp_full = np.zeros(N, np.float64)
    imp_full[:length] = imp
    sig = np.concatenate([x[..., 0], np.zeros((B, N))], axis=-1)          # pad right
    ker = np.concatenate([np.zeros(N), imp_full])[None, :]                # pad left
    out = np.fft.irfft(np.fft.rfft(sig, axis=-1) * np.fft.rfft(ker, axis=-1), axis=-1)
    out = out[..., out.shape[-1] // 2:]
    return out[..., None]


if __name__ == "__main__":
    key = jax.random.PRNGKey(0)
    k_noise, k_x1, k_x2 = jax.random.split(key, 3)

    # Deterministic parameter init (module __init__): noise ~ U(-1, 1) of shape
    # (length,), decay = initial_decay = 5.0, wet = initial_wet = 0.0
    noise = jax.random.uniform(k_noise, (LENGTH,), minval=-1.0, maxval=1.0,
                               dtype=jnp.float32)
    decay = jnp.float32(5.0)
    wet = jnp.float32(0.0)

    # Test 1: multiple chunks + a 2-step "parallel" grid (exercises the halo path).
    B1, N1 = 2, 4096
    x1 = jax.random.normal(k_x1, (B1, N1, 1), dtype=jnp.float32)
    y1 = jax.block_until_ready(reverb_forward(x1, noise, decay, wet))
    ref1 = reverb_reference(np.asarray(x1), np.asarray(noise), 5.0, 0.0)
    np.testing.assert_allclose(np.asarray(y1), ref1, atol=1e-3, rtol=1e-3)

    # Test 2: odd shapes (batch not a sublane multiple, N not a lane multiple,
    # single chunk -> zero halo path, full-extent row block).
    B2, N2 = 3, 200
    x2 = jax.random.normal(k_x2, (B2, N2, 1), dtype=jnp.float32)
    y2 = jax.block_until_ready(reverb_forward(x2, noise, decay, wet))
    ref2 = reverb_reference(np.asarray(x2), np.asarray(noise), 5.0, 0.0)
    np.testing.assert_allclose(np.asarray(y2), ref2, atol=1e-3, rtol=1e-3)

    print("KERNEL_OK")
</pallas_src>

<mosaic_0001>
module attributes {stable_mosaic.version = 11 : i64} {
  func.func @_reverb_fir_kernel(%arg0: i32, %arg1: memref<8x512xf32, #tpu.memory_space<vmem>>, %arg2: memref<8x128xf32, #tpu.memory_space<vmem>>, %arg3: memref<256x128xf32, #tpu.memory_space<vmem>>, %arg4: memref<8x512xf32, #tpu.memory_space<vmem>>) attributes {dimension_semantics = [#tpu.dimension_semantics<parallel>], iteration_bounds = array<i64: 2>, scalar_prefetch = 0 : i64, scratch_operands = 0 : i64, tpu.core_type = #tpu.core_type<tc>, window_params = [{transform_indices = @transform_0, window_bounds = array<i64: 8, 512>}, {transform_indices = @transform_1, window_bounds = array<i64: 8, 128>}, {pipeline_mode = #tpu.pipeline_mode<synchronous>, transform_indices = @transform_2, window_bounds = array<i64: 256, 128>}, {transform_indices = @transform_3, window_bounds = array<i64: 8, 512>}]} {
    %c0 = arith.constant 0 : index
    %c0_0 = arith.constant 0 : index
    %0 = vector.load %arg3[%c0, %c0_0] : memref<256x128xf32, #tpu.memory_space<vmem>>, vector<256x128xf32>
    %1 = vector.extract_strided_slice %0 {offsets = [0, 0], sizes = [128, 128], strides = [1, 1]} : vector<256x128xf32> to vector<128x128xf32>
    %2 = vector.extract_strided_slice %0 {offsets = [128, 0], sizes = [128, 128], strides = [1, 1]} : vector<256x128xf32> to vector<128x128xf32>
    %c0_1 = arith.constant 0 : index
    %c0_2 = arith.constant 0 : index
    %3 = vector.load %arg2[%c0_1, %c0_2] : memref<8x128xf32, #tpu.memory_space<vmem>>, vector<8x128xf32>
    %cst = arith.constant dense<0.000000e+00> : vector<8x128xf32>
    %4 = tpu.matmul %3, %1, %cst {dimension_numbers = #tpu.dot_dimension_numbers<[1], [0], [0], [1], [0, 0, 1, 1], [], []>} : vector<8x128xf32>, vector<128x128xf32>, vector<8x128xf32> -> vector<8x128xf32>
    %c0_3 = arith.constant 0 : index
    %c0_4 = arith.constant 0 : index
    %5 = vector.load %arg1[%c0_3, %c0_4] : memref<8x512xf32, #tpu.memory_space<vmem>>, vector<8x128xf32>
    %cst_5 = arith.constant dense<0.000000e+00> : vector<8x128xf32>
    %6 = tpu.matmul %5, %2, %cst_5 {dimension_numbers = #tpu.dot_dimension_numbers<[1], [0], [0], [1], [0, 0, 1, 1], [], []>} : vector<8x128xf32>, vector<128x128xf32>, vector<8x128xf32> -> vector<8x128xf32>
    %7 = arith.addf %4, %6 : vector<8x128xf32>
    %c0_6 = arith.constant 0 : index
    %c0_7 = arith.constant 0 : index
    %8 = vector.load %arg4[%c0_6, %c0_7] : memref<8x512xf32, #tpu.memory_space<vmem>>, vector<8x128xf32>
    tpu.vector_store %arg4[%c0_6, %c0_7], %7 {strides = array<i32>} : memref<8x512xf32, #tpu.memory_space<vmem>>, vector<8x128xf32>,
    %c0_8 = arith.constant 0 : index
    %c0_9 = arith.constant 0 : index
    %9 = vector.load %arg1[%c0_8, %c0_9] : memref<8x512xf32, #tpu.memory_space<vmem>>, vector<8x256xf32>
    %cst_10 = arith.constant dense<0.000000e+00> : vector<8x128xf32>
    %10 = tpu.matmul %9, %0, %cst_10 {dimension_numbers = #tpu.dot_dimension_numbers<[1], [0], [0], [1], [0, 0, 1, 1], [], []>} : vector<8x256xf32>, vector<256x128xf32>, vector<8x128xf32> -> vector<8x128xf32>
    %c0_11 = arith.constant 0 : index
    %c128 = arith.constant 128 : index
    %11 = vector.load %arg4[%c0_11, %c128] : memref<8x512xf32, #tpu.memory_space<vmem>>, vector<8x128xf32>
    tpu.vector_store %arg4[%c0_11, %c128], %10 {strides = array<i32>} : memref<8x512xf32, #tpu.memory_space<vmem>>, vector<8x128xf32>,
    %c0_12 = arith.constant 0 : index
    %c128_13 = arith.constant 128 : index
    %12 = vector.load %arg1[%c0_12, %c128_13] : memref<8x512xf32, #tpu.memory_space<vmem>>, vector<8x256xf32>
    %cst_14 = arith.constant dense<0.000000e+00> : vector<8x128xf32>
    %13 = tpu.matmul %12, %0, %cst_14 {dimension_numbers = #tpu.dot_dimension_numbers<[1], [0], [0], [1], [0, 0, 1, 1], [], []>} : vector<8x256xf32>, vector<256x128xf32>, vector<8x128xf32> -> vector<8x128xf32>
    %c0_15 = arith.constant 0 : index
    %c256 = arith.constant 256 : index
    %14 = vector.load %arg4[%c0_15, %c256] : memref<8x512xf32, #tpu.memory_space<vmem>>, vector<8x128xf32>
    tpu.vector_store %arg4[%c0_15, %c256], %13 {strides = array<i32>} : memref<8x512xf32, #tpu.memory_space<vmem>>, vector<8x128xf32>,
    %c0_16 = arith.constant 0 : index
    %c256_17 = arith.constant 256 : index
    %15 = vector.load %arg1[%c0_16, %c256_17] : memref<8x512xf32, #tpu.memory_space<vmem>>, vector<8x256xf32>
    %cst_18 = arith.constant dense<0.000000e+00> : vector<8x128xf32>
    %16 = tpu.matmul %15, %0, %cst_18 {dimension_numbers = #tpu.dot_dimension_numbers<[1], [0], [0], [1], [0, 0, 1, 1], [], []>} : vector<8x256xf32>, vector<256x128xf32>, vector<8x128xf32> -> vector<8x128xf32>
    %c0_19 = arith.constant 0 : index
    %c384 = arith.constant 384 : index
    %17 = vector.load %arg4[%c0_19, %c384] : memref<8x512xf32, #tpu.memory_space<vmem>>, vector<8x128xf32>
    tpu.vector_store %arg4[%c0_19, %c384], %16 {strides = array<i32>} : memref<8x512xf32, #tpu.memory_space<vmem>>, vector<8x128xf32>,
    return
  }
  func.func @transform_0(%arg0: i32) -> (i32, i32) {
    %c0_i32 = arith.constant 0 : i32
    %c0_i32_0 = arith.constant 0 : i32
    return %arg0, %c0_i32 : i32, i32
  }
  func.func @transform_1(%arg0: i32) -> (i32, i32) {
    %c0_i32 = arith.constant 0 : i32
    %c0_i32_0 = arith.constant 0 : i32
    return %arg0, %c0_i32 : i32, i32
  }
  func.func @transform_2(%arg0: i32) -> (i32, i32) {
    %c0_i32 = arith.constant 0 : i32
    %c0_i32_0 = arith.constant 0 : i32
    %c0_i32_1 = arith.constant 0 : i32
    return %c0_i32, %c0_i32_0 : i32, i32
  }
  func.func @transform_3(%arg0: i32) -> (i32, i32) {
    %c0_i32 = arith.constant 0 : i32
    %c0_i32_0 = arith.constant 0 : i32
    return %arg0, %c0_i32 : i32, i32
  }
}

</mosaic_0001>

<bundles_post_ra>
// kernel: tpu_custom_call.1
= control target key start
LH: loop header
LB: loop body
LE: loop exit
PB: predicated region body
PF: predicated region fallthrough
CT: control target
= control target key end

     0   :  { %8 = vsyncpa [#allocation3], 0  ;;  %s1674_s0 = inlined_call_operand.hbm [shape: f32[16,512], index: 0, kind: input, shape index: {}]   ;;  %s1675_s1 = inlined_call_operand.hbm [shape: f32[16,128], index: 1, kind: input, shape index: {}]   ;;  %s1676_s2 = inlined_call_operand.hbm [shape: f32[256,128], index: 2, kind: input, shape index: {}]   ;;  %s1677_s3 = inlined_call_operand.hbm [shape: f32[16,512], index: 3, kind: output, shape index: {}]  }
   0x1   :  { %10 = vsyncpa [#allocation3 + $0x1], 0 }
   0x2   :  { %11 = vsyncpa [#allocation6], 0 }
   0x3   :  { %13 = vsyncpa [#allocation6 + $0x1], 0 }
   0x4   :  { %14 = vsyncpa [#allocation4], 0 }
   0x5   :  { %16 = vsyncpa [#allocation4 + $0x1], 0  ;;  %s1229_s12 = smov 0   ;;  %s1231_s13 = smov 0  }
   0x6   :  { %s1233_s14 = smov 0   ;;  %s1235_s15 = smov 0  }
   0x7 LB: > { %s1250_s16 = sadd.s32 4294967295, %s1199_s15   ;;  %s749_s17 = sadd.s32 4294967294, %s1199_s15   ;;  %s1199_s15 = sphi %s1235_s15, %s1699_s15   ;;  %s1195_s14 = sphi %s1233_s14, %s1698_s14   ;;  %s1191_s13 = sphi %s1231_s13, %s1697_s13   ;;  %s1187_s12 = sphi %s1229_s12, %s1696_s12  }
   0x8   : > { %p42_p0 = scmp.ne.s32.totalorder %s1191_s13, %s1187_s12  ;;  %p1678_p1 = scmp.eq.s32.totalorder %s1250_s16, 0 }
   0x9   : > { %p119_p3 = scmp.eq.s32.totalorder %s749_s17, 1  ;;  %p750_p5 = scmp.ge.s32.totalorder %s1199_s15, 1 }
   0xa   : > { %p1259_p4 = por %p1678_p1, %p42_p0  ;;  %p126_p7 = scmp.lt.s32.totalorder %s1199_s15, 3 }
   0xb   : > { %p1264_p6 = por %p119_p3, %p42_p0  ;;  %s1201_s21 = smov [#allocation7]  }
   0xc   : > { %s1682_s18 = scalar_select %p1259_p4, 1, 0 }
   0xd   : > { %s1683_s19 = scalar_select %p1264_p6, 1, 0 }
   0xe   : > { %p1269_p8 = pnand %p750_p5, %p126_p7  ;;  %s138_s22 = sshll.u32 %s1201_s21, 4  ;;  %s139_s22 = int_to_ptr.vmem [resolvable:$true] %s138_s22 }
   0xf   : > { %s1283_s24 = sadd.s32 1, %s1199_s15   ;;  %s29_s25 = sadd.s32 1, %s1195_s14 }
  0x10   : > { %s1684_s20 = scalar_select %p1269_p8, 1, 0 }
  0x11   : > { %p989_p9 = pneg %p1269_p8  ;;  %s26_s26 = ssub.s32 %s1199_s15, %s1283_s24 }
  0x12   : > { %s1056_s27 = scalar_lea.vmem %s139_s22, 4096  ;;  %p1064_p5 = scmp.lt.s32.totalorder %s139_s22, %s139_s22 }
  0x13   : > { %p1278_p11 = pnand %p989_p9, %p1678_p1  ;;  %p1057_p13 = scmp.ne.s32.totalorder %s139_s22, %s1056_s27 }
  0x14   : > { %p1065_p7 = scmp.lt.s32.totalorder %s1056_s27, %s1056_s27 }
  0x15   : > { %p1047_p12 = pneg %p1278_p11 }
  0x16   : > { %p1066_p10 = por %p1065_p7, %p1064_p5 }
  0x17   : > { %p1059_p0 = pnand %p1057_p13, %p1047_p12 }
  0x19   : > { %p1060_p3 = pneg %p1059_p0 }
  0x1b   : > { %p1067_p2 = pnand %p1066_p10, %p1060_p3 }
  0x1d   : > { %1070 = shalt.err (!%p1067_p2)
}
  0x1e   : > { %s1202_s28 = smov 128   ;;  %s1203_s29 = smov 8  }
  0x1f   : > { %992 = dma.hbm_to_vmem [thread:$0]  (!%p1278_p11), %s1676_s2, 4096, %s139_s22, [#allocation6], %s1202_s28, %s1202_s28, %s1203_s29  }
  0x20   : > { %p27_p9 = scmp.eq.s32.totalorder %s26_s26, 0  ;;  %p36_p10 = scmp.ne.s32.totalorder %s1195_s14, %s1191_s13 }
  0x21   : > { %p37_p2 = scmp.eq.s32.totalorder %s1199_s15, 0  ;;  %p1005_p12 = scmp.lt.s32.totalorder %s1199_s15, 2 }
  0x22   : > { %s1300_s5 = scalar_select %p27_p9, %s1195_s14, %s29_s25  }
  0x23   : > { %p38_p13 = por %p37_p2, %p36_p10  ;;  %p1686_p0 = scmp.eq.s32.totalorder %s1250_s16, 1 }
  0x24   : > { %s1309_s7 = sand.u32 1, %s1195_s14   ;;  %s768_s8 = sshll.u32 %s1199_s15, 9 }
  0x25   : > { %p1304_p3 = por %p1686_p0, %p36_p10  ;;  %s753_s9 = sshll.u32 %s1309_s7, 5 }
  0x26   : > { %s1316_s17 = scalar_lea.hbm %s1674_s0, %s768_s8  ;;  %s156_s21 = scalar_lea.vmem [#allocation2], %s753_s9 }
  0x27   : > { %s1687_s6 = scalar_select %p1304_p3, 1, 0 }
  0x28   : > { %s164_s22 = sshll.u32 %s156_s21, 4  ;;  %p1318_p11 = pnand %p1005_p12, %p38_p13  ;;  %s165_s22 = int_to_ptr.vmem [resolvable:$true] %s164_s22 }
  0x29   : > { %s171_s25 = sand.u32 1, %s1199_s15   ;;  %s153_s26 = scalar_lea.sflag [#allocation3], %s1309_s7 }
  0x2a   : > { %s1071_s27 = scalar_lea.hbm %s1316_s17, 512  ;;  %p1073_p7 = pneg %p1318_p11 }
  0x2b   : > { %p1072_p5 = scmp.ne.s32.totalorder %s1316_s17, %s1071_s27  ;;  %s1076_s30 = scalar_lea.hbm %s1674_s0, 1024 }
  0x2c   : > { %p1077_p2 = scmp.lt.s32.totalorder %s1316_s17, %s1674_s0  ;;  %p1078_p12 = scmp.lt.s32.totalorder %s1076_s30, %s1071_s27 }
  0x2d   : > { %p1074_p9 = pnand %p1073_p7, %p1072_p5 }
  0x2e   : > { %p1079_p13 = por %p1078_p12, %p1077_p2 }
  0x2f   : > { %p1075_p10 = pneg %p1074_p9 }
  0x31   : > { %p1080_p0 = pnand %p1079_p13, %p1075_p10 }
  0x33   : > { %1083 = shalt.err (!%p1080_p0)
}
  0x34   : > { %s1084_s9 = scalar_lea.vmem %s165_s22, 512  ;;  %s1204_s10 = smov [#allocation2]  }
  0x35   : > { %p1085_p1 = scmp.ne.s32.totalorder %s165_s22, %s1084_s9  ;;  %s1089_s11 = sshll.u32 %s1204_s10, 4  ;;  %s1090_s11 = int_to_ptr.vmem [resolvable:$false] %s1089_s11 }
  0x36   : > { %s1091_s21 = scalar_lea.vmem %s1090_s11, 1024  ;;  %p1092_p9 = scmp.lt.s32.totalorder %s165_s22, %s1090_s11 }
  0x37   : > { %p1087_p6 = pnand %p1085_p1, %p1073_p7  ;;  %p1093_p3 = scmp.lt.s32.totalorder %s1091_s21, %s1084_s9 }
  0x39   : > { %p1088_p5 = pneg %p1087_p6  ;;  %p1094_p4 = por %p1093_p3, %p1092_p9 }
  0x3b   : > { %p1095_p8 = pnand %p1094_p4, %p1088_p5 }
  0x3d   : > { %1098 = shalt.err (!%p1095_p8)
}
  0x3e   : > { %996 = dma.hbm_to_vmem [thread:$0]  (!%p1318_p11), %s1316_s17, 512, %s165_s22, %s153_s26  }
  0x3f   : > { %s756_s27 = sshll.u32 %s1309_s7, 3  ;;  %s757_s28 = sshll.u32 %s1199_s15, 7 }
  0x40   : > { %s1349_s4 = scalar_lea.hbm %s1675_s1, %s757_s28  ;;  %s175_s8 = scalar_lea.vmem [#allocation5], %s756_s27 }
  0x41   : > { %s182_s9 = sshll.u32 %s175_s8, 4  ;;  %s172_s10 = scalar_lea.sflag [#allocation6], %s171_s25  ;;  %s183_s9 = int_to_ptr.vmem [resolvable:$true] %s182_s9 }
  0x42   : > { %s1099_s11 = scalar_lea.hbm %s1349_s4, 128  ;;  %s1104_s22 = scalar_lea.hbm %s1675_s1, 256 }
  0x43   : > { %p1100_p1 = scmp.ne.s32.totalorder %s1349_s4, %s1099_s11  ;;  %p1105_p8 = scmp.lt.s32.totalorder %s1349_s4, %s1675_s1 }
  0x44   : > { %p1106_p3 = scmp.lt.s32.totalorder %s1104_s22, %s1099_s11 }
  0x45   : > { %p1102_p4 = pnand %p1100_p1, %p1073_p7 }
  0x46   : > { %p1107_p10 = por %p1106_p3, %p1105_p8 }
  0x47   : > { %p1103_p6 = pneg %p1102_p4 }
  0x49   : > { %p1108_p2 = pnand %p1107_p10, %p1103_p6 }
  0x4b   : > { %1111 = shalt.err (!%p1108_p2)
}
  0x4c   : > { %s1112_s27 = scalar_lea.vmem %s183_s9, 128  ;;  %s1205_s25 = smov [#allocation5]  }
  0x4d   : > { %p1113_p12 = scmp.ne.s32.totalorder %s183_s9, %s1112_s27  ;;  %s1117_s28 = sshll.u32 %s1205_s25, 4  ;;  %s1118_s28 = int_to_ptr.vmem [resolvable:$false] %s1117_s28 }
  0x4e   : > { %s1119_s29 = scalar_lea.vmem %s1118_s28, 256  ;;  %p1120_p5 = scmp.lt.s32.totalorder %s183_s9, %s1118_s28 }
  0x4f   : > { %p1115_p13 = pnand %p1113_p12, %p1073_p7  ;;  %p1121_p9 = scmp.lt.s32.totalorder %s1119_s29, %s1112_s27 }
  0x51   : > { %p1116_p0 = pneg %p1115_p13  ;;  %p1122_p1 = por %p1121_p9, %p1120_p5 }
  0x53   : > { %p1123_p4 = pnand %p1122_p1, %p1116_p0 }
  0x55   : > { %1126 = shalt.err (!%p1123_p4)
}
  0x56   : > { %999 = dma.hbm_to_vmem [thread:$0]  (!%p1318_p11), %s1349_s4, 128, %s183_s9, %s172_s10  }
  0x57   : > { %p1689_p6 = scmp.ne.s32.totalorder %s1684_s20, 0 }
  0x58   : > { %s1374_s30 = sand.u32 (!%p1689_p6), 1, %s1191_s13   ;;  %p1690_p7 = scmp.ne.s32.totalorder (!%p1689_p6), %s1682_s18, 0 }
  0x59   : > { %191 = sbr.rel (%p1689_p6) target bundleno = 409 (0x199), region = 32  ;;  %s759_s8 = sshll.u32 (!%p1689_p6), %s1374_s30, 5 }
  0x5a   : > { %s194_s11 = scalar_lea.sflag (!%p1689_p6), [#allocation3], %s1374_s30  ;;  %s1380_s7 = scalar_lea.vmem (!%p1689_p6), [#allocation2], %s759_s8 }
  0x5e   : > { %1170 = dma.done.wait (%p1690_p7), %s194_s11, 512  }
  0x5f   : > { %1172 = vsyncadd (%p1690_p7), %s194_s11, 4294966784  ;;  %s202_s20 = sand.u32 1, %s1250_s16   ;;  %s760_s23 = sshll.u32 %s1374_s30, 3 }
  0x60   : > { %s203_s4 = scalar_lea.sflag [#allocation6], %s202_s20  ;;  %s1388_s9 = scalar_lea.vmem [#allocation5], %s760_s23 }
  0x61   : > { %1174 = dma.done.wait (%p1690_p7), %s203_s4, 128  }
  0x62   : > { %1176 = vsyncadd (%p1690_p7), %s203_s4, 4294967168  ;;  %p1691_p11 = scmp.eq.s32.totalorder %s1250_s16, 0 }
  0x64   : > { %1178 = dma.done.wait (%p1691_p11), [#allocation6], 4096   ;;  %p1692_p8 = pmov %p1691_p11 }
  0x65   : > { %v1206_v0 = vmov 0.0   ;;  %vm1207_vm0 = vmmov 0   ;;  %v1402_v1 = vld [vmem:[#allocation7 + $0xf8] sm:$0xff]  ;;  %v1406_v3 = vld [vmem:[#allocation7 + $0xf0] sm:$0xff]  ;;  %v1414_v5 = vld [vmem:[#allocation7 + $0xe8] sm:$0xff]  ;;  %s237_s18 = scalar_lea.vmem [#allocation8], %s759_s8 }
  0x66   : > { %1180 = vsyncadd (%p1692_p8), [#allocation6], 4294963200  ;;  %909 = vmatprep.subr.mxu0 %v1206_v0  ;;  %944 = vmatprep.subr.mxu1 %v1206_v0  ;;  %v1404_v2 = vld [vmem:[#allocation7 + $0x78] sm:$0xff]  ;;  %v1410_v4 = vld [vmem:[#allocation7 + $0x70] sm:$0xff]  ;;  %s769_s10 = sshll.u32 %s1250_s16, 9  ;;  %s647_s17 = sshll.u32 %s237_s18, 4  ;;  %s648_s17 = int_to_ptr.vmem [resolvable:$true] %s647_s17 }
  0x67   : > { %941 = vmatprep.mubr.msk.f32.mxu0 %vm1207_vm0, %v1206_v0  ;;  %976 = vmatprep.mubr.msk.f32.mxu1 %vm1207_vm0, %v1206_v0  ;;  %v1416_v6 = vld [vmem:[#allocation7 + $0x68] sm:$0xff]  ;;  %v1422_v7 = vld [vmem:[#allocation7 + $0xe0] sm:$0xff]  ;;  %v1430_v9 = vld [vmem:[#allocation7 + $0xd8] sm:$0xff]  ;;  %s645_s21 = scalar_lea.hbm %s1677_s3, %s769_s10  ;;  %s633_s27 = scalar_lea.sflag [#allocation4], %s1374_s30 }
  0x68   : > { %910 = vmatpush3.msra.mxu0 %v1402_v1  ;;  %945 = vmatpush3.msra.mxu1 %v1404_v2  ;;  %v1424_v8 = vld [vmem:[#allocation7 + $0x60] sm:$0xff]  ;;  %v1432_v10 = vld [vmem:[#allocation7 + $0x58] sm:$0xff]  ;;  %v1438_v11 = vld [vmem:[#allocation7 + $0xd0] sm:$0xff]  ;;  %s1127_s25 = scalar_lea.vmem %s648_s17, 512  ;;  %p1693_p10 = scmp.ne.s32.totalorder %s1687_s6, 0 }
  0x69   : > { %911 = vmatprep.subr.mxu0 %v1206_v0  ;;  %946 = vmatprep.subr.mxu1 %v1206_v0  ;;  %v1440_v12 = vld [vmem:[#allocation7 + $0x50] sm:$0xff]  ;;  %v1446_v13 = vld [vmem:[#allocation7 + $0xc8] sm:$0xff]  ;;  %v1454_v15 = vld [vmem:[#allocation7 + $0xc0] sm:$0xff]  ;;  %p1128_p3 = scmp.ne.s32.totalorder %s648_s17, %s1127_s25  ;;  %s1208_s28 = smov [#allocation8]  }
  0x6a   : > { %912 = vmatpush3.msra.mxu0 %v1406_v3  ;;  %947 = vmatpush3.msra.mxu1 %v1410_v4  ;;  %v1448_v14 = vld [vmem:[#allocation7 + $0x48] sm:$0xff]  ;;  %v1456_v16 = vld [vmem:[#allocation7 + $0x40] sm:$0xff]  ;;  %v1462_v17 = vld [vmem:[#allocation7 + $0xb8] sm:$0xff]  ;;  %s1131_s29 = sshll.u32 %s1208_s28, 4  ;;  %s1132_s29 = int_to_ptr.vmem [resolvable:$false] %s1131_s29 }
  0x6b   : > { %913 = vmatprep.subr.mxu0 %v1206_v0  ;;  %948 = vmatprep.subr.mxu1 %v1206_v0  ;;  %v1464_v18 = vld [vmem:[#allocation7 + $0x38] sm:$0xff]  ;;  %v1470_v19 = vld [vmem:[#allocation7 + $0xb0] sm:$0xff]  ;;  %v1478_v21 = vld [vmem:[#allocation7 + $0xa8] sm:$0xff]  ;;  %p1129_p2 = pnand %p1128_p3, %p1693_p10  ;;  %s1133_s8 = scalar_lea.vmem %s1132_s29, 1024 }
  0x6c   : > { %914 = vmatpush3.msra.mxu0 %v1414_v5  ;;  %949 = vmatpush3.msra.mxu1 %v1416_v6  ;;  %v1472_v20 = vld [vmem:[#allocation7 + $0x30] sm:$0xff]  ;;  %v1480_v22 = vld [vmem:[#allocation7 + $0x28] sm:$0xff]  ;;  %v1486_v23 = vld [vmem:[#allocation7 + $0xa0] sm:$0xff]  ;;  %p1134_p13 = scmp.lt.s32.totalorder %s648_s17, %s1132_s29  ;;  %p1135_p0 = scmp.lt.s32.totalorder %s1133_s8, %s1127_s25 }
  0x6d   : > { %915 = vmatprep.subr.mxu0 %v1206_v0  ;;  %950 = vmatprep.subr.mxu1 %v1206_v0  ;;  %v1488_v24 = vld [vmem:[#allocation7 + $0x20] sm:$0xff]  ;;  %v1494_v25 = vld [vmem:[#allocation7 + $0x98] sm:$0xff]  ;;  %v1502_v27 = vld [vmem:[#allocation7 + $0x90] sm:$0xff]  ;;  %p1130_p12 = pneg %p1129_p2 }
  0x6e   : > { %916 = vmatpush3.msra.mxu0 %v1422_v7  ;;  %951 = vmatpush3.msra.mxu1 %v1424_v8  ;;  %v1496_v26 = vld [vmem:[#allocation7 + $0x18] sm:$0xff]  ;;  %v1504_v28 = vld [vmem:[#allocation7 + $0x10] sm:$0xff]  ;;  %v1510_v29 = vld [vmem:[#allocation7 + $0x88] sm:$0xff]  ;;  %p1136_p5 = por %p1135_p0, %p1134_p13 }
  0x6f   : > { %917 = vmatprep.subr.mxu0 %v1206_v0  ;;  %952 = vmatprep.subr.mxu1 %v1206_v0  ;;  %v1512_v30 = vld [vmem:[#allocation7 + $0x8] sm:$0xff]  ;;  %v1518_v31 = vld [vmem:[#allocation7 + $0x80] sm:$0xff]  ;;  %v1525_v33 = vld [vmem:[%s1380_s7] sm:$0xff] }
  0x70   : > { %918 = vmatpush3.msra.mxu0 %v1430_v9  ;;  %953 = vmatpush3.msra.mxu1 %v1432_v10  ;;  %v1520_v32 = vld [vmem:[#allocation7] sm:$0xff]  ;;  %v270_v34 = vld [vmem:[%s1388_s9] sm:$0xff]  ;;  %v560_v37 = vld [vmem:[%s1380_s7 + $0x18] sm:$0xff]  ;;  %p1137_p9 = pnand %p1136_p5, %p1130_p12 }
  0x71   : > { %919 = vmatprep.subr.mxu0 %v1206_v0  ;;  %954 = vmatprep.subr.mxu1 %v1206_v0  ;;  %v1535_v35 = vld [vmem:[%s1380_s7 + $0x8] sm:$0xff]  ;;  %v487_v36 = vld [vmem:[%s1380_s7 + $0x10] sm:$0xff] }
  0x72   : > { %920 = vmatpush3.msra.mxu0 %v1438_v11  ;;  %955 = vmatpush3.msra.mxu1 %v1440_v12 }
  0x73   : > { %921 = vmatprep.subr.mxu0 %v1206_v0  ;;  %956 = vmatprep.subr.mxu1 %v1206_v0 }
  0x74   : > { %922 = vmatpush3.msra.mxu0 %v1446_v13  ;;  %957 = vmatpush3.msra.mxu1 %v1448_v14 }
  0x75   : > { %923 = vmatprep.subr.mxu0 %v1206_v0  ;;  %958 = vmatprep.subr.mxu1 %v1206_v0 }
  0x76   : > { %924 = vmatpush3.msra.mxu0 %v1454_v15  ;;  %959 = vmatpush3.msra.mxu1 %v1456_v16 }
  0x77   : > { %925 = vmatprep.subr.mxu0 %v1206_v0  ;;  %960 = vmatprep.subr.mxu1 %v1206_v0 }
  0x78   : > { %926 = vmatpush3.msra.mxu0 %v1462_v17  ;;  %961 = vmatpush3.msra.mxu1 %v1464_v18 }
  0x79   : > { %927 = vmatprep.subr.mxu0 %v1206_v0  ;;  %962 = vmatprep.subr.mxu1 %v1206_v0 }
  0x7a   : > { %928 = vmatpush3.msra.mxu0 %v1470_v19  ;;  %963 = vmatpush3.msra.mxu1 %v1472_v20 }
  0x7b   : > { %929 = vmatprep.subr.mxu0 %v1206_v0  ;;  %964 = vmatprep.subr.mxu1 %v1206_v0 }
  0x7c   : > { %930 = vmatpush3.msra.mxu0 %v1478_v21  ;;  %965 = vmatpush3.msra.mxu1 %v1480_v22 }
  0x7d   : > { %931 = vmatprep.subr.mxu0 %v1206_v0  ;;  %966 = vmatprep.subr.mxu1 %v1206_v0 }
  0x7e   : > { %932 = vmatpush3.msra.mxu0 %v1486_v23  ;;  %967 = vmatpush3.msra.mxu1 %v1488_v24 }
  0x7f   : > { %933 = vmatprep.subr.mxu0 %v1206_v0  ;;  %968 = vmatprep.subr.mxu1 %v1206_v0 }
  0x80   : > { %934 = vmatpush3.msra.mxu0 %v1494_v25  ;;  %969 = vmatpush3.msra.mxu1 %v1496_v26 }
  0x81   : > { %935 = vmatprep.subr.mxu0 %v1206_v0  ;;  %970 = vmatprep.subr.mxu1 %v1206_v0 }
  0x82   : > { %936 = vmatpush3.msra.mxu0 %v1502_v27  ;;  %971 = vmatpush3.msra.mxu1 %v1504_v28 }
  0x83   : > { %937 = vmatprep.subr.mxu0 %v1206_v0  ;;  %972 = vmatprep.subr.mxu1 %v1206_v0 }
  0x84   : > { %938 = vmatpush3.msra.mxu0 %v1510_v29  ;;  %973 = vmatpush3.msra.mxu1 %v1512_v30 }
  0x85   : > { %939 = vmatprep.subr.mxu0 %v1206_v0  ;;  %974 = vmatprep.subr.mxu1 %v1206_v0 }
  0x86   : > { %940 = vmatpush3.msra.mxu0 %v1518_v31  ;;  %975 = vmatpush3.msra.mxu1 %v1520_v32 }
  0x87   : > { %942 = vmatmul.mubr.f32.vlgmr.msra.gmra.mxu0 %v1525_v33  ;;  %804 = vmatprep.subr.mxu0 %v1402_v1 }
  0x88   : > { %977 = vmatmul.mubr.f32.vlgmr.msra.gmra.mxu1 %v270_v34  ;;  %805 = vmatpush3.msra.mxu0 %v1404_v2 }
  0x89   : > { %806 = vmatprep.subr.mxu0 %v1406_v3  ;;  %839 = vmatprep.subr.mxu1 %v1402_v1 }
  0x8a   : > { %807 = vmatpush3.msra.mxu0 %v1410_v4  ;;  %479 = vmatprep.mubr.f32.mxu0 %v1535_v35 }
  0x8b   : > { %808 = vmatprep.subr.mxu0 %v1414_v5  ;;  %840 = vmatpush3.msra.mxu1 %v1404_v2 }
  0x8c   : > { %809 = vmatpush3.msra.mxu0 %v1416_v6  ;;  %841 = vmatprep.subr.mxu1 %v1406_v3 }
  0x8d   : > { %810 = vmatprep.subr.mxu0 %v1422_v7  ;;  %842 = vmatpush3.msra.mxu1 %v1410_v4 }
  0x8e   : > { %811 = vmatpush3.msra.mxu0 %v1424_v8  ;;  %843 = vmatprep.subr.mxu1 %v1414_v5 }
  0x8f   : > { %812 = vmatprep.subr.mxu0 %v1430_v9  ;;  %844 = vmatpush3.msra.mxu1 %v1416_v6 }
  0x90   : > { %813 = vmatpush3.msra.mxu0 %v1432_v10  ;;  %845 = vmatprep.subr.mxu1 %v1422_v7 }
  0x91   : > { %814 = vmatprep.subr.mxu0 %v1438_v11  ;;  %846 = vmatpush3.msra.mxu1 %v1424_v8 }
  0x92   : > { %815 = vmatpush3.msra.mxu0 %v1440_v12  ;;  %847 = vmatprep.subr.mxu1 %v1430_v9 }
  0x93   : > { %816 = vmatprep.subr.mxu0 %v1446_v13  ;;  %848 = vmatpush3.msra.mxu1 %v1432_v10 }
  0x94   : > { %817 = vmatpush3.msra.mxu0 %v1448_v14  ;;  %849 = vmatprep.subr.mxu1 %v1438_v11 }
  0x95   : > { %818 = vmatprep.subr.mxu0 %v1454_v15  ;;  %850 = vmatpush3.msra.mxu1 %v1440_v12 }
  0x96   : > { %819 = vmatpush3.msra.mxu0 %v1456_v16  ;;  %851 = vmatprep.subr.mxu1 %v1446_v13 }
  0x97   : > { %820 = vmatprep.subr.mxu0 %v1462_v17  ;;  %852 = vmatpush3.msra.mxu1 %v1448_v14 }
  0x98   : > { %821 = vmatpush3.msra.mxu0 %v1464_v18  ;;  %853 = vmatprep.subr.mxu1 %v1454_v15 }
  0x99   : > { %822 = vmatprep.subr.mxu0 %v1470_v19  ;;  %854 = vmatpush3.msra.mxu1 %v1456_v16 }
  0x9a   : > { %823 = vmatpush3.msra.mxu0 %v1472_v20  ;;  %855 = vmatprep.subr.mxu1 %v1462_v17 }
  0x9b   : > { %824 = vmatprep.subr.mxu0 %v1478_v21  ;;  %856 = vmatpush3.msra.mxu1 %v1464_v18 }
  0x9c   : > { %825 = vmatpush3.msra.mxu0 %v1480_v22  ;;  %857 = vmatprep.subr.mxu1 %v1470_v19 }
  0x9d   : > { %826 = vmatprep.subr.mxu0 %v1486_v23  ;;  %858 = vmatpush3.msra.mxu1 %v1472_v20 }
  0x9e   : > { %827 = vmatpush3.msra.mxu0 %v1488_v24  ;;  %859 = vmatprep.subr.mxu1 %v1478_v21 }
  0x9f   : > { %828 = vmatprep.subr.mxu0 %v1494_v25  ;;  %860 = vmatpush3.msra.mxu1 %v1480_v22 }
  0xa0   : > { %829 = vmatpush3.msra.mxu0 %v1496_v26  ;;  %861 = vmatprep.subr.mxu1 %v1486_v23 }
  0xa1   : > { %830 = vmatprep.subr.mxu0 %v1502_v27  ;;  %862 = vmatpush3.msra.mxu1 %v1488_v24 }
  0xa2   : > { %831 = vmatpush3.msra.mxu0 %v1504_v28  ;;  %863 = vmatprep.subr.mxu1 %v1494_v25 }
  0xa3   : > { %832 = vmatprep.subr.mxu0 %v1510_v29  ;;  %864 = vmatpush3.msra.mxu1 %v1496_v26 }
  0xa4   : > { %833 = vmatpush3.msra.mxu0 %v1512_v30  ;;  %865 = vmatprep.subr.mxu1 %v1502_v27 }
  0xa5   : > { %834 = vmatprep.subr.mxu0 %v1518_v31  ;;  %866 = vmatpush3.msra.mxu1 %v1504_v28 }
  0xa6   : > { %835 = vmatpush3.msra.mxu0 %v1520_v32  ;;  %867 = vmatprep.subr.mxu1 %v1510_v29 }
  0xa7   : > { %480 = vmatmul.mubr.f32.vlgmr.msra.gmra.mxu0 %v1525_v33  ;;  %874 = vmatprep.subr.mxu0 %v1402_v1 }
  0xa8   : > { %875 = vmatpush3.msra.mxu0 %v1404_v2  ;;  %868 = vmatpush3.msra.mxu1 %v1512_v30 }
  0xa9   : > { %876 = vmatprep.subr.mxu0 %v1406_v3  ;;  %869 = vmatprep.subr.mxu1 %v1518_v31 }
  0xaa   : > { %877 = vmatpush3.msra.mxu0 %v1410_v4  ;;  %870 = vmatpush3.msra.mxu1 %v1520_v32 }
  0xab   : > { %878 = vmatprep.subr.mxu0 %v1414_v5  ;;  %552 = vmatprep.mubr.f32.mxu1 %v487_v36 }
  0xac   : > { %879 = vmatpush3.msra.mxu0 %v1416_v6  ;;  %553 = vmatmul.mubr.f32.vlgmr.msra.gmra.mxu1 %v1535_v35 }
  0xad   : > { %880 = vmatprep.subr.mxu0 %v1422_v7  ;;  %625 = vmatprep.mubr.f32.mxu0 %v560_v37 }
  0xae   : > { %881 = vmatpush3.msra.mxu0 %v1424_v8 }
  0xaf   : > { %882 = vmatprep.subr.mxu0 %v1430_v9 }
  0xb0   : > { %883 = vmatpush3.msra.mxu0 %v1432_v10 }
  0xb1   : > { %884 = vmatprep.subr.mxu0 %v1438_v11 }
  0xb2   : > { %885 = vmatpush3.msra.mxu0 %v1440_v12 }
  0xb3   : > { %886 = vmatprep.subr.mxu0 %v1446_v13 }
  0xb4   : > { %887 = vmatpush3.msra.mxu0 %v1448_v14 }
  0xb5   : > { %888 = vmatprep.subr.mxu0 %v1454_v15 }
  0xb6   : > { %889 = vmatpush3.msra.mxu0 %v1456_v16 }
  0xb7   : > { %890 = vmatprep.subr.mxu0 %v1462_v17 }
  0xb8   : > { %891 = vmatpush3.msra.mxu0 %v1464_v18 }
  0xb9   : > { %892 = vmatprep.subr.mxu0 %v1470_v19 }
  0xba   : > { %893 = vmatpush3.msra.mxu0 %v1472_v20 }
  0xbb   : > { %894 = vmatprep.subr.mxu0 %v1478_v21 }
  0xbc   : > { %895 = vmatpush3.msra.mxu0 %v1480_v22 }
  0xbd   : > { %896 = vmatprep.subr.mxu0 %v1486_v23 }
  0xbe   : > { %897 = vmatpush3.msra.mxu0 %v1488_v24 }
  0xbf   : > { %898 = vmatprep.subr.mxu0 %v1494_v25 }
  0xc0   : > { %899 = vmatpush3.msra.mxu0 %v1496_v26 }
  0xc1   : > { %900 = vmatprep.subr.mxu0 %v1502_v27 }
  0xc2   : > { %901 = vmatpush3.msra.mxu0 %v1504_v28 }
  0xc3   : > { %902 = vmatprep.subr.mxu0 %v1510_v29 }
  0xc4   : > { %903 = vmatpush3.msra.mxu0 %v1512_v30 }
  0xc5   : > { %904 = vmatprep.subr.mxu0 %v1518_v31 }
  0xc6   : > { %905 = vmatpush3.msra.mxu0 %v1520_v32 }
  0xc7   : > { %626 = vmatmul.mubr.f32.vlgmr.msra.gmra.mxu0 %v487_v36 }
 0x147   : > { %v338_v38 = vpop.f32.mrf.mxu0 }
 0x148   : > { %v408_v39 = vpop.f32.mrf.mxu1 }
 0x149   : > { %v409_v40 = vadd.f32 %v408_v39, %v338_v38  ;;  %v943_v41 = vpop.f32.mrf.mxu0 }
 0x14a   : > { %v978_v42 = vpop.f32.mrf.mxu1 }
 0x14b   : > { %412 = vst [vmem:[%s237_s18] sm:$0xff] %v409_v40 }
 0x167   : > { %v836_v43 = vpop.f32.mrf.mxu0 }
 0x169   : > { %v837_v44 = vpop.f32.mrf.mxu0 }
 0x16a   : > { %v838_v45 = vadd.f32 %v837_v44, %v836_v43 }
 0x16c   : > { %485 = vst [vmem:[%s237_s18 + $0x8] sm:$0xff] %v838_v45  ;;  %v871_v46 = vpop.f32.mrf.mxu1 }
 0x16e   : > { %v872_v47 = vpop.f32.mrf.mxu1 }
 0x16f   : > { %v873_v48 = vadd.f32 %v872_v47, %v871_v46 }
 0x171   : > { %558 = vst [vmem:[%s237_s18 + $0x10] sm:$0xff] %v873_v48 }
 0x187   : > { %v906_v49 = vpop.f32.mrf.mxu0 }
 0x189   : > { %v907_v50 = vpop.f32.mrf.mxu0 }
 0x18a   : > { %v908_v51 = vadd.f32 %v907_v50, %v906_v49 }
 0x18c   : > { %631 = vst [vmem:[%s237_s18 + $0x18] sm:$0xff] %v908_v51 }
 0x18d   : > { %1140 = shalt.err (!%p1137_p9)
}
 0x18e   : > { %s1141_s16 = scalar_lea.hbm %s645_s21, 512  ;;  %s1145_s7 = scalar_lea.hbm %s1677_s3, 1024 }
 0x18f   : > { %p1142_p1 = scmp.ne.s32.totalorder %s645_s21, %s1141_s16  ;;  %p1146_p7 = scmp.lt.s32.totalorder %s645_s21, %s1677_s3 }
 0x190   : > { %p1147_p11 = scmp.lt.s32.totalorder %s1145_s7, %s1141_s16 }
 0x191   : > { %p1143_p4 = pnand %p1142_p1, %p1693_p10 }
 0x192   : > { %p1148_p8 = por %p1147_p11, %p1146_p7 }
 0x193   : > { %p1144_p6 = pneg %p1143_p4 }
 0x195   : > { %p1149_p3 = pnand %p1148_p8, %p1144_p6 }
 0x197   : > { %1152 = shalt.err (!%p1149_p3)
}
 0x198   : > { %987 = dma.vmem_to_hbm [thread:$0]  (%p1693_p10), %s648_s17, 512, %s645_s21, %s633_s27  }
 0x199 PF: > { %s659_s4 = sand.u32 1, %s1187_s12   ;;  %p1694_p2 = scmp.ne.s32.totalorder %s1683_s19, 0 }
 0x19a   : > { %p1695_p12 = scmp.ge.s32.totalorder %s1199_s15, 2  ;;  %s660_s9 = scalar_lea.sflag [#allocation4], %s659_s4 }
 0x19c   : > { %p1001_p13 = pnand %p1695_p12, %p1694_p2 }
 0x19e   : > { %p1002_p0 = pneg %p1001_p13 }
 0x1a0   : > { %1182 = dma.done.wait (%p1002_p0), %s660_s9, 512  }
 0x1a1   : > { %1184 = vsyncadd (%p1002_p0), %s660_s9, 4294966784  ;;  %p19_p5 = scmp.ge.s32.totalorder %s1283_s24, 4   ;;  %s1696_s12 = smov %s1191_s13 }
 0x1a2   : > { %s1697_s13 = smov %s1195_s14  ;;  %s1698_s14 = smov %s1300_s5 }
 0x1a3   : > { %s1699_s15 = smov %s1283_s24  ;;  %21 = sbr.rel (!%p19_p5) target bundleno = 7 (0x7), region = 94 }
 0x1a8   :  { %665 = vsyncpa [#allocation3], 1 }
 0x1a9   :  { %667 = vsyncpa [#allocation3 + $0x1], 1 }
 0x1aa   :  { %668 = vsyncpa [#allocation6], 1 }
 0x1ab   :  { %670 = vsyncpa [#allocation6 + $0x1], 1 }
 0x1ac   :  { %671 = vsyncpa [#allocation4], 1 }
 0x1ad   :  { %673 = vsyncpa [#allocation4 + $0x1], 1 }

</bundles_post_ra>
